<compile_context>
chip_gen: v6e
topology: v6e:2x2x1
jax: 0.10.0
libtpu: 0.0.40
codegen_flags: <defaults>
</compile_context>

<pallas_src>
import math

import jax
import jax.numpy as jnp
from jax.experimental import pallas as pl
from jax.experimental.pallas import tpu as pltpu


def _hw_params():
    """(target_tile_bytes, vmem_limit_bytes) tuned per TPU generation."""
    vmem_cap = None
    try:
        info = pltpu.get_tpu_info()
        vmem_cap = getattr(info, "vmem_capacity_bytes", None)
    except Exception:
        vmem_cap = None
    if vmem_cap is None or vmem_cap <= 64 * 1024 * 1024:
        # v7x-class (64 MiB VMEM, ~3.2 TB/s HBM): bigger tiles amortize the
        # ~0.35 us/step overhead; keep 2x(in)+2x(out) buffers under ~48 MiB.
        return 6 * 1024 * 1024, 48 * 1024 * 1024
    # v5e / v6e (128 MiB VMEM): plenty of headroom for 8 MiB tiles.
    return 8 * 1024 * 1024, 64 * 1024 * 1024


def _layer_scale_kernel(x_ref, gamma_ref, o_ref):
    # x_ref: (tile_rows, L); gamma_ref: (1, L) f32, broadcast over rows.
    x = x_ref[...].astype(jnp.float32)
    o_ref[...] = (x * gamma_ref[...]).astype(o_ref.dtype)


def _scale_rows(x2d, gamma_row, out_dtype, target_tile_bytes, vmem_limit_bytes,
                alias_in_out=False):
    """y[r, :] = x2d[r, :] * gamma_row[0, :] for a 2-D (rows, L) view."""
    rows, lane_dim = x2d.shape
    in_size = jnp.dtype(x2d.dtype).itemsize
    out_size = jnp.dtype(out_dtype).itemsize

    # Sublane packing of the narrower dtype: 8 rows (f32) / 16 (bf16) / 32 (i8).
    pack = max(8, 32 // min(in_size, out_size))

    rows_for_target = max(1, target_tile_bytes // (lane_dim * max(in_size, out_size)))
    tile_rows = max(pack, (rows_for_target // pack) * pack)
    if tile_rows >= rows:
        tile_rows = rows          # full-extent block (legal even if rows % 8 != 0)

    grid = (pl.cdiv(rows, tile_rows),)   # partial last block is masked by Pallas

    extra = {}
    if alias_in_out and jnp.dtype(out_dtype) == x2d.dtype:
        extra["input_output_aliases"] = {0: 0}   # LayerScale(inplace=True) analogue

    return pl.pallas_call(
        _layer_scale_kernel,
        out_shape=jax.ShapeDtypeStruct((rows, lane_dim), out_dtype),
        grid_spec=pltpu.PrefetchScalarGridSpec(
            num_scalar_prefetch=0,
            grid=grid,
            in_specs=[
                pl.BlockSpec((tile_rows, lane_dim), lambda i: (i, 0)),
                pl.BlockSpec((1, lane_dim), lambda i: (0, 0)),   # gamma: resident
            ],
            out_specs=pl.BlockSpec((tile_rows, lane_dim), lambda i: (i, 0)),
        ),
        compiler_params=pltpu.CompilerParams(
            dimension_semantics=("parallel",),   # shard grid steps across TCs (v7x)
            vmem_limit_bytes=vmem_limit_bytes,
        ),
        **extra,
    )(x2d, gamma_row)


def layer_scale(x, gamma, *, inplace=False):
    """open_clip LayerScale.forward: x * gamma (gamma broadcast over last dim)."""
    orig_shape = x.shape
    dim = orig_shape[-1]
    assert gamma.shape == (dim,), (gamma.shape, dim)

    out_dtype = jnp.result_type(x.dtype, gamma.dtype)   # PyTorch-style promotion
    gamma_f32 = gamma.astype(jnp.float32)
    target_tile_bytes, vmem_limit_bytes = _hw_params()

    x2d = x.reshape(-1, dim)              # free reshape (row-major contiguous)
    rows = x2d.shape[0]
    if rows == 0:
        return jnp.zeros(orig_shape, out_dtype)

    alias = inplace and (jnp.dtype(out_dtype) == x.dtype)

    # Lane-dense fold: fold consecutive rows so the lane width becomes
    # lcm(dim, 128) -- always a multiple of 128 -> unmasked full-width stores.
    fold = 128 // math.gcd(dim, 128)

    if fold == 1:
        # dim already a multiple of 128: no repack needed.
        out2d = _scale_rows(x2d, gamma_f32.reshape(1, dim), out_dtype,
                            target_tile_bytes, vmem_limit_bytes, alias)
        return out2d.reshape(orig_shape)

    gamma_folded = jnp.tile(gamma_f32, fold).reshape(1, fold * dim)
    rows_bulk = (rows // fold) * fold

    if rows_bulk == rows:
        xf = x2d.reshape(rows // fold, fold * dim)
        outf = _scale_rows(xf, gamma_folded, out_dtype,
                           target_tile_bytes, vmem_limit_bytes, alias)
        return outf.reshape(orig_shape)

    # rows not a multiple of fold: keep the folded (lane-dense) layout for the
    # bulk and handle the < fold leftover rows with a second tiny pallas_call.
    parts = []
    if rows_bulk > 0:
        xf = x2d[:rows_bulk].reshape(rows_bulk // fold, fold * dim)
        outf = _scale_rows(xf, gamma_folded, out_dtype,
                           target_tile_bytes, vmem_limit_bytes, False)
        parts.append(outf.reshape(rows_bulk, dim))
    out_tail = _scale_rows(x2d[rows_bulk:], gamma_f32.reshape(1, dim), out_dtype,
                           target_tile_bytes, vmem_limit_bytes, False)
    parts.append(out_tail)
    out2d = jnp.concatenate(parts, axis=0) if len(parts) > 1 else parts[0]
    return out2d.reshape(orig_shape)


if __name__ == "__main__":
    init_values = 1e-5
    key = jax.random.PRNGKey(0)
    k0, k1, k2 = jax.random.split(key, 3)

    # 1) dim=32: gcd fold=4 -> 128-wide lane-dense layout; rows % fold == 0.
    x1 = jax.random.normal(k0, (2, 8, 32), dtype=jnp.float32)
    g1 = jnp.full((32,), init_values, dtype=jnp.float32)
    y1 = layer_scale(x1, g1)
    jax.block_until_ready(y1)
    assert y1.shape == x1.shape and y1.dtype == x1.dtype
    assert jnp.allclose(y1, x1 * g1, atol=1e-6, rtol=1e-6)

    # 1b) inplace-style variant (input_output_aliases={0: 0}).
    y1b = layer_scale(x1, g1, inplace=True)
    jax.block_until_ready(y1b)
    assert jnp.allclose(y1b, x1 * g1, atol=1e-6, rtol=1e-6)

    # 2) dim=48: gcd fold=8, rows=15 not a multiple of fold -> lane-dense bulk
    #    plus tiny tail call, stitched together.
    x2 = jax.random.normal(k1, (3, 5, 48), dtype=jnp.float32)
    g2 = jnp.full((48,), init_values, dtype=jnp.float32)
    y2 = layer_scale(x2, g2)
    jax.block_until_ready(y2)
    assert jnp.allclose(y2, x2 * g2, atol=1e-6, rtol=1e-6)

    # 3) bf16 x with f32 gamma -> promoted f32 output (PyTorch promotion),
    #    dim=256 already a multiple of 128 (fold == 1 path).
    x3 = jax.random.normal(k2, (2, 8, 256), dtype=jnp.bfloat16)
    g3 = jnp.full((256,), init_values, dtype=jnp.float32)
    y3 = layer_scale(x3, g3)
    jax.block_until_ready(y3)
    assert y3.dtype == jnp.float32
    assert jnp.allclose(y3, x3.astype(jnp.float32) * g3, atol=1e-6, rtol=1e-6)

    print("KERNEL_OK")
</pallas_src>

<mosaic_0001>
module attributes {stable_mosaic.version = 11 : i64} {
  func.func @_layer_scale_kernel(%arg0: i32, %arg1: memref<4x128xf32, #tpu.memory_space<vmem>>, %arg2: memref<1x128xf32, #tpu.memory_space<vmem>>, %arg3: memref<4x128xf32, #tpu.memory_space<vmem>>) attributes {dimension_semantics = [#tpu.dimension_semantics<parallel>], iteration_bounds = array<i64: 1>, scalar_prefetch = 0 : i64, scratch_operands = 0 : i64, tpu.core_type = #tpu.core_type<tc>, window_params = [{transform_indices = @transform_0, window_bounds = array<i64: 4, 128>}, {pipeline_mode = #tpu.pipeline_mode<synchronous>, transform_indices = @transform_1, window_bounds = array<i64: 1, 128>}, {transform_indices = @transform_2, window_bounds = array<i64: 4, 128>}]} {
    %c0 = arith.constant 0 : index
    %c0_0 = arith.constant 0 : index
    %0 = vector.load %arg1[%c0, %c0_0] : memref<4x128xf32, #tpu.memory_space<vmem>>, vector<4x128xf32>
    %c0_1 = arith.constant 0 : index
    %c0_2 = arith.constant 0 : index
    %1 = vector.load %arg2[%c0_1, %c0_2] : memref<1x128xf32, #tpu.memory_space<vmem>>, vector<1x128xf32>
    %2 = vector.broadcast %1 : vector<1x128xf32> to vector<4x128xf32>
    %3 = arith.mulf %0, %2 : vector<4x128xf32>
    %c0_3 = arith.constant 0 : index
    %c0_4 = arith.constant 0 : index
    %4 = vector.load %arg3[%c0_3, %c0_4] : memref<4x128xf32, #tpu.memory_space<vmem>>, vector<4x128xf32>
    tpu.vector_store %arg3[%c0_3, %c0_4], %3 {strides = array<i32>} : memref<4x128xf32, #tpu.memory_space<vmem>>, vector<4x128xf32>,
    return
  }
  func.func @transform_0(%arg0: i32) -> (i32, i32) {
    %c0_i32 = arith.constant 0 : i32
    %c0_i32_0 = arith.constant 0 : i32
    return %arg0, %c0_i32 : i32, i32
  }
  func.func @transform_1(%arg0: i32) -> (i32, i32) {
    %c0_i32 = arith.constant 0 : i32
    %c0_i32_0 = arith.constant 0 : i32
    %c0_i32_1 = arith.constant 0 : i32
    return %c0_i32, %c0_i32_0 : i32, i32
  }
  func.func @transform_2(%arg0: i32) -> (i32, i32) {
    %c0_i32 = arith.constant 0 : i32
    %c0_i32_0 = arith.constant 0 : i32
    return %arg0, %c0_i32 : i32, i32
  }
}

</mosaic_0001>

<bundles_post_ra>
// kernel: tpu_custom_call.1
= control target key start
LH: loop header
LB: loop body
LE: loop exit
PB: predicated region body
PF: predicated region fallthrough
CT: control target
= control target key end

     0   :  { %7 = vsyncpa [#allocation3], 0  ;;  %s122_s0 = inlined_call_operand.hbm [shape: f32[4,128], index: 0, kind: input, shape index: {}]   ;;  %s123_s1 = inlined_call_operand.vmem [shape: f32[1,128], index: 1, kind: input, shape index: {}]   ;;  %s124_s2 = inlined_call_operand.hbm [shape: f32[4,128], index: 2, kind: output, shape index: {}]  }
   0x1   :  { %8 = vsyncpa [#allocation4], 0  ;;  %s96_s9 = smov [#allocation2]  }
   0x2   :  { %s15_s10 = sshll.u32 %s96_s9, 4  ;;  %s16_s10 = int_to_ptr.vmem [resolvable:$true] %s15_s10 }
   0x3   :  { %s60_s11 = scalar_lea.vmem %s16_s10, 64  ;;  %p65_p1 = scmp.lt.s32.totalorder %s16_s10, %s16_s10 }
   0x4   :  { %p61_p0 = scmp.ne.s32.totalorder %s16_s10, %s60_s11  ;;  %p66_p2 = scmp.lt.s32.totalorder %s60_s11, %s60_s11 }
   0x6   :  { %p67_p3 = por %p66_p2, %p65_p1 }
   0x8   :  { %p68_p4 = pnand %p67_p3, %p61_p0 }
   0xa   :  { %71 = shalt.err (!%p68_p4)
}
   0xb   :  { %18 = dma.hbm_to_vmem [thread:$0]  %s122_s0, 64, %s16_s10, [#allocation3]  }
   0xc   :  { %92 = dma.done.wait [#allocation3], 64  }
   0xd   :  { %93 = vsyncadd [#allocation3], 4294967232  ;;  %s97_s14 = smov [#allocation5]   ;;  %v24_v0 = vld [vmem:[#allocation2] sm:$0xf] }
   0xe   :  { %s40_s15 = sshll.u32 %s97_s14, 4  ;;  %v49_v1 = vld [vmem:[%s123_s1] ss:$0 sm:$0xff]  ;;  %s41_s15 = int_to_ptr.vmem [resolvable:$true] %s40_s15 }
   0xf   :  { %v32_v2 = vmul.f32 %v49_v1, %v24_v0  ;;  %s72_s18 = scalar_lea.vmem %s41_s15, 64  ;;  %p77_p6 = scmp.lt.s32.totalorder %s41_s15, %s41_s15 }
  0x10   :  { %p73_p5 = scmp.ne.s32.totalorder %s41_s15, %s72_s18  ;;  %p78_p7 = scmp.lt.s32.totalorder %s72_s18, %s72_s18 }
  0x11   :  { %33 = vst [vmem:[#allocation5] sm:$0xf] %v32_v2 }
  0x12   :  { %p79_p8 = por %p78_p7, %p77_p6 }
  0x14   :  { %p80_p9 = pnand %p79_p8, %p73_p5 }
  0x16   :  { %83 = shalt.err (!%p80_p9)
}
  0x17   :  { %43 = dma.vmem_to_hbm [thread:$0]  %s41_s15, 64, %s124_s2, [#allocation4]  }
  0x18   :  { %94 = dma.done.wait [#allocation4], 64  }
  0x19   :  { %95 = vsyncadd [#allocation4], 4294967232 }
  0x1a   :  { %47 = vsyncpa [#allocation3], 1 }
  0x1b   :  { %48 = vsyncpa [#allocation4], 1 }

</bundles_post_ra>
